<compile_context>
chip_gen: v5e
topology: v5e:2x2
jax: 0.10.0
libtpu: 0.0.40
codegen_flags: <defaults>
</compile_context>

<pallas_src>
import functools

import jax
import jax.numpy as jnp
from jax import lax
from jax.experimental import pallas as pl
from jax.experimental.pallas import tpu as pltpu

# 48 MiB scoped VMEM: above the 16/32 MiB defaults, below v7x's 64 MiB physical.
_VMEM_LIMIT = 48 * 1024 * 1024


def _fit_tile(dim, target):
    """Full extent for small dims, else the target (targets are chosen as
    multiples of 8 / 128 so the (8,128) BlockSpec rule is always satisfied)."""
    return dim if dim <= target else target


def _fit_k_tile(K, target=512):
    """K tile must divide K exactly (no masking of a ragged reduction tail)."""
    if K <= target:
        return K
    for cand in range(target, 0, -128):
        if K % cand == 0:
            return cand
    return K  # odd K: fall back to a single full-K reduction step


# ----------------- shared tiled linear (GEMM + bias, K-tiled) -----------------
def _linear_kernel(x_ref, w_ref, b_ref, o_ref, acc_ref):
    k = pl.program_id(2)

    @pl.when(k == 0)
    def _():
        acc_ref[...] = jnp.broadcast_to(b_ref[...].astype(jnp.float32),
                                        acc_ref.shape)

    acc_ref[...] += jnp.dot(x_ref[...], w_ref[...],
                            preferred_element_type=jnp.float32)

    @pl.when(k == pl.num_programs(2) - 1)
    def _():
        o_ref[...] = acc_ref[...].astype(o_ref.dtype)


def linear(x2d, w, b, *, tm=256, tn=512, tk=512, out_dtype=jnp.float32):
    """(M,K) @ (K,N) + (N,) -> (M,N).  bf16 MXU operands, f32 accumulation in a
    VMEM scratch, K-tiled reduction so per-buffer VMEM stays ~0.5-2 MiB."""
    M, K = x2d.shape
    N = w.shape[1]
    tm = _fit_tile(M, tm)
    tn = _fit_tile(N, tn)
    tk = _fit_k_tile(K, tk)
    grid = (pl.cdiv(M, tm), pl.cdiv(N, tn), K // tk)
    return pl.pallas_call(
        _linear_kernel,
        grid=grid,
        in_specs=[pl.BlockSpec((tm, tk), lambda i, j, k: (i, k)),
                  pl.BlockSpec((tk, tn), lambda i, j, k: (k, j)),
                  pl.BlockSpec((1, tn), lambda i, j, k: (0, j))],
        out_specs=pl.BlockSpec((tm, tn), lambda i, j, k: (i, j)),
        out_shape=jax.ShapeDtypeStruct((M, N), out_dtype),
        scratch_shapes=[pltpu.VMEM((tm, tn), jnp.float32)],
        compiler_params=pltpu.CompilerParams(
            dimension_semantics=("parallel", "parallel", "arbitrary"),
            vmem_limit_bytes=_VMEM_LIMIT),
    )(x2d.astype(jnp.bfloat16), w.astype(jnp.bfloat16),
      b.reshape(1, N).astype(jnp.float32))


# --------------------------- GRU recurrence kernel ----------------------------
# Time-major.  gx = x @ [Wxr|Wxz|Wxc] + b is precomputed outside (no serial
# dependence), so each timestep only runs the two h-dependent matmuls.
# The reference's "state is None" first step is algebraically identical to the
# general update with h == 0, so the VMEM-carried state is zeroed at t == 0.
def _gru_scan_kernel(gx_ref, whrz_ref, whc_ref, y_ref, h_scr, *, seq_len):
    ti = pl.program_id(1)
    ts = gx_ref.shape[0]
    H = whc_ref.shape[0]

    @pl.when(ti == 0)
    def _():
        h_scr[...] = jnp.zeros_like(h_scr)

    whrz = whrz_ref[...]                        # (H, 2H) = [Whr | Whz], bf16
    whc = whc_ref[...]                          # (H, H), bf16
    # Masked tail: the last time block may overhang S (cdiv grid); padded
    # timesteps must not perturb the carried state.
    n_valid = jnp.minimum(ts, seq_len - ti * ts)

    def step(t, h):                             # h: (tb, H) f32 carry
        gx = gx_ref[t].astype(jnp.float32)      # (tb, 3H); gate math stays f32
        rz = jax.nn.sigmoid(
            gx[:, :2 * H]
            + jnp.dot(h.astype(jnp.bfloat16), whrz,
                      preferred_element_type=jnp.float32))
        r = rz[:, :H]
        z = rz[:, H:]
        c = jnp.tanh(
            gx[:, 2 * H:]
            + jnp.dot((h * r).astype(jnp.bfloat16), whc,
                      preferred_element_type=jnp.float32))
        h = jnp.where(t < n_valid, z * h + (1.0 - z) * c, h)
        y_ref[t] = h.astype(y_ref.dtype)
        return h

    # fori_loop with a partial unroll (instead of a 32-deep Python unroll)
    # bounds vreg live ranges while keeping LLO scheduler visibility.
    h_scr[...] = lax.fori_loop(0, ts, step, h_scr[...], unroll=min(ts, 8))


def _pick_batch_block(B):
    # v7x megacore: split the batch across the 2 TensorCores when each half is
    # still a multiple of 8 sublanes; no-op cost on v5e/v6e (1 TC).
    if B >= 16 and B % 16 == 0:
        return B // 2
    return B


def _pick_time_block(S, tb, H, *, cap=32, budget=32 * 1024 * 1024):
    # VMEM budget: gx block (bf16, double-buffered) + y block (bf16, double-
    # buffered) per timestep; weights (bf16, single-buffered) + h scratch once.
    # A ~32 MiB working-set budget stays inside the 48 MiB scoped limit we
    # request and inside v7x's 64 MiB physical VMEM with headroom.
    fixed = 3 * H * H * 2 + tb * H * 4
    per_step = 2 * (tb * 3 * H * 2) + 2 * (tb * H * 2)
    ts = max(1, min(cap, S, (budget - fixed) // max(per_step, 1)))
    return int(ts)


def _gru_pallas_call(gx, whrz, whc, *, ts, tb, single_buffer_weights):
    S, B, H3 = gx.shape
    H = whc.shape[0]
    # Constant recurrent weights: single-buffered (index_map never changes, so
    # the default 2-deep pipelining would only duplicate the weight bytes).
    w_mode = {"pipeline_mode": pl.Buffered(1)} if single_buffer_weights else {}
    kernel = functools.partial(_gru_scan_kernel, seq_len=S)
    return pl.pallas_call(
        kernel,
        grid=(pl.cdiv(B, tb), pl.cdiv(S, ts)),
        in_specs=[
            pl.BlockSpec((ts, tb, H3), lambda bi, ti: (ti, bi, 0)),
            pl.BlockSpec((H, 2 * H), lambda bi, ti: (0, 0), **w_mode),
            pl.BlockSpec((H, H), lambda bi, ti: (0, 0), **w_mode),
        ],
        out_specs=pl.BlockSpec((ts, tb, H), lambda bi, ti: (ti, bi, 0)),
        out_shape=jax.ShapeDtypeStruct((S, B, H), jnp.bfloat16),
        scratch_shapes=[pltpu.VMEM((tb, H), jnp.float32)],
        compiler_params=pltpu.CompilerParams(
            dimension_semantics=("parallel", "arbitrary"),
            vmem_limit_bytes=_VMEM_LIMIT),
    )(gx, whrz, whc)


def gru_recurrence(gx, whrz, whc):
    """gx: (S, B, 3H) bf16 precomputed input gates -> y: (S, B, H) bf16."""
    S, B, _ = gx.shape
    H = whc.shape[0]
    tb = _pick_batch_block(B)
    ts = _pick_time_block(S, tb, H)
    try:
        return _gru_pallas_call(gx, whrz, whc, ts=ts, tb=tb,
                                single_buffer_weights=True)
    except Exception:
        # TODO(synk): drop this fallback once pipeline_mode=pl.Buffered(1) on
        # the outer pallas_call pipeline is guaranteed by the deployed JAX; the
        # fallback only costs duplicated weight buffers, not correctness.
        return _gru_pallas_call(gx, whrz, whc, ts=ts, tb=tb,
                                single_buffer_weights=False)


# ------------------- decoder with the transpose folded in ---------------------
_DEC_TS = 16  # static time rows per decoder block (unrolled scatter loop)


def _decoder_kernel(y_ref, w_ref, b_ref, o_ref):
    ts = y_ref.shape[0]
    w = w_ref[...]                              # (H, tv) bf16
    b = b_ref[...].astype(jnp.float32)          # (1, tv)
    # The (S,B,H)->(B,S,H) activation transpose is folded in here: each
    # time-row of the time-major y block is matmul'ed on the MXU and written
    # straight into the batch-major logits block, so the transpose never
    # round-trips HBM.
    for t in range(ts):                         # static; ts <= _DEC_TS
        o_ref[:, t, :] = (jnp.dot(y_ref[t], w,
                                  preferred_element_type=jnp.float32) + b)


def decoder(y_tm, w, b, *, tb=256, tv=512):
    """Time-major y (S, B, H) -> batch-major logits (B, S, V), bf16 MXU ops."""
    S, B, H = y_tm.shape
    V = w.shape[1]
    ts = S if S <= _DEC_TS else _DEC_TS
    tb = _fit_tile(B, tb)
    tv = _fit_tile(V, tv)
    # TODO(synk): for very large H, add a K-tiled reduction axis here as in
    # `linear`; full-H weight blocks are fine up to a few thousand hidden dims.
    return pl.pallas_call(
        _decoder_kernel,
        grid=(pl.cdiv(B, tb), pl.cdiv(S, ts), pl.cdiv(V, tv)),
        in_specs=[pl.BlockSpec((ts, tb, H), lambda bi, si, vi: (si, bi, 0)),
                  pl.BlockSpec((H, tv), lambda bi, si, vi: (0, vi)),
                  pl.BlockSpec((1, tv), lambda bi, si, vi: (0, vi))],
        out_specs=pl.BlockSpec((tb, ts, tv), lambda bi, si, vi: (bi, si, vi)),
        out_shape=jax.ShapeDtypeStruct((B, S, V), jnp.float32),
        compiler_params=pltpu.CompilerParams(
            dimension_semantics=("parallel", "parallel", "parallel"),
            vmem_limit_bytes=_VMEM_LIMIT),
    )(y_tm.astype(jnp.bfloat16), w.astype(jnp.bfloat16),
      b.reshape(1, V).astype(jnp.float32))


def decode_logits(y_tm, w, b):
    try:
        return decoder(y_tm, w, b)
    except Exception:
        # Fallback: materialize the transpose in XLA and reuse the generic
        # K-tiled linear (one extra HBM round trip of y).
        S, B, H = y_tm.shape
        y = jnp.transpose(y_tm, (1, 0, 2)).reshape(B * S, H)
        return linear(y, w, b).reshape(B, S, -1)


# ------------------------------ SeqRNN forward --------------------------------
def seq_rnn_forward(tokens, params):
    B, S = tokens.shape
    # Embedding gathered directly in time-major order (tokens.T): no (B,S,E) ->
    # (S,B,E) activation transpose is ever materialized.
    # TODO(synk): the gather itself stays in XLA (a data-dependent row gather
    # would need a manual-DMA Pallas kernel).
    x = jnp.take(params["embed"], tokens.T, axis=0).astype(jnp.bfloat16)  # (S,B,E)
    states = []
    for wx3, bx3, whrz, whc in params["gru_packed"]:
        H = whc.shape[0]
        E = x.shape[-1]
        # Hoisted input-side gates for the whole sequence: one big parallel GEMM.
        gx = linear(x.reshape(S * B, E), wx3, bx3,
                    out_dtype=jnp.bfloat16).reshape(S, B, 3 * H)
        x = gru_recurrence(gx, whrz, whc)              # (S, B, H) bf16, time-major
        states.append(x[-1].astype(jnp.float32))       # h_last == y[S-1]
    logits = decode_logits(x, params["dec_w"], params["dec_b"])  # (B, S, V) f32
    return logits, states


# --------------------------- pure-JAX f32 reference ---------------------------
def _gru_layer_ref(x, wxr, bxr, wxz, bxz, wxc, bxc, whr, whz, whc):
    S, B, _ = x.shape
    H = whr.shape[0]
    h = jnp.zeros((B, H), jnp.float32)
    ys = []
    for t in range(S):
        xt = x[t]
        r = jax.nn.sigmoid(xt @ wxr + bxr + h @ whr)
        z = jax.nn.sigmoid(xt @ wxz + bxz + h @ whz)
        c = jnp.tanh(xt @ wxc + bxc + (h * r) @ whc)
        h = z * h + (1.0 - z) * c
        ys.append(h)
    return jnp.stack(ys), h


def seq_rnn_ref(tokens, params):
    emb = jnp.take(params["embed"], tokens, axis=0)
    h = jnp.transpose(emb, (1, 0, 2))
    states = []
    for lp in params["gru_layers"]:
        h, h_last = _gru_layer_ref(h, *lp)
        states.append(h_last)
    y = jnp.transpose(h, (1, 0, 2))
    logits = y @ params["dec_w"] + params["dec_b"]
    return logits, states


# ------------------------------ parameter init --------------------------------
def init_params(key, vocab_size, embed_size, hidden_size, num_layers):
    k_embed, k_dec, *k_layers = jax.random.split(key, 2 + num_layers)

    def lin_w(k, fan_in, shape):
        bound = 1.0 / (fan_in ** 0.5)
        return jax.random.uniform(k, shape, jnp.float32, -bound, bound)

    params = {
        "embed": jax.random.normal(k_embed, (vocab_size, embed_size), jnp.float32),
        "dec_w": lin_w(jax.random.fold_in(k_dec, 0), hidden_size, (hidden_size, vocab_size)),
        "dec_b": lin_w(jax.random.fold_in(k_dec, 1), hidden_size, (vocab_size,)),
        "gru_layers": [],   # per-gate f32 weights (pure-JAX reference)
        "gru_packed": [],   # fused bf16 weights consumed by the Pallas kernels
    }
    in_size = embed_size
    for l in range(num_layers):
        ks = jax.random.split(k_layers[l], 9)
        wxr = lin_w(ks[0], in_size, (in_size, hidden_size))
        bxr = lin_w(ks[1], in_size, (hidden_size,))
        wxz = lin_w(ks[2], in_size, (in_size, hidden_size))
        bxz = lin_w(ks[3], in_size, (hidden_size,))
        wxc = lin_w(ks[4], in_size, (in_size, hidden_size))
        bxc = lin_w(ks[5], in_size, (hidden_size,))
        whr = lin_w(ks[6], hidden_size, (hidden_size, hidden_size))
        whz = lin_w(ks[7], hidden_size, (hidden_size, hidden_size))
        whc = lin_w(ks[8], hidden_size, (hidden_size, hidden_size))
        params["gru_layers"].append((wxr, bxr, wxz, bxz, wxc, bxc, whr, whz, whc))
        params["gru_packed"].append((
            jnp.concatenate([wxr, wxz, wxc], axis=1).astype(jnp.bfloat16),  # (E, 3H)
            jnp.concatenate([bxr, bxz, bxc], axis=0),                       # (3H,) f32
            jnp.concatenate([whr, whz], axis=1).astype(jnp.bfloat16),       # (H, 2H)
            whc.astype(jnp.bfloat16),                                       # (H, H)
        ))
        in_size = hidden_size
    return params


if __name__ == "__main__":
    vocab_size, embed_size, hidden_size, num_layers = 50, 16, 32, 2
    B, S = 2, 8

    key = jax.random.PRNGKey(0)
    k_params, k_tok = jax.random.split(key)
    params = init_params(k_params, vocab_size, embed_size, hidden_size, num_layers)
    tokens = jax.random.randint(k_tok, (B, S), 0, vocab_size, dtype=jnp.int32)

    logits, states = seq_rnn_forward(tokens, params)
    logits = jax.block_until_ready(logits)
    states = [jax.block_until_ready(s) for s in states]

    ref_logits, ref_states = seq_rnn_ref(tokens, params)
    assert logits.shape == (B, S, vocab_size)
    assert all(s.shape == (B, hidden_size) for s in states)
    # Kernels use bf16 MXU operands (f32 accumulation / f32 gate math); compare
    # against the all-f32 reference with a bf16-appropriate tolerance.  Wiring
    # mistakes would show up as O(1) errors, well above this threshold.
    assert jnp.allclose(logits, ref_logits, rtol=1e-1, atol=1e-1), (
        float(jnp.max(jnp.abs(logits - ref_logits))))
    for s, rs in zip(states, ref_states):
        assert jnp.allclose(s, rs, rtol=1e-1, atol=1e-1), (
            float(jnp.max(jnp.abs(s - rs))))

    print("KERNEL_OK")
</pallas_src>

<mosaic_0001>
module attributes {stable_mosaic.version = 11 : i64} {
  func.func @_linear_kernel(%arg0: i32, %arg1: i32, %arg2: i32, %arg3: memref<16x16xbf16, #tpu.memory_space<vmem>>, %arg4: memref<16x96xbf16, #tpu.memory_space<vmem>>, %arg5: memref<1x96xf32, #tpu.memory_space<vmem>>, %arg6: memref<16x96xbf16, #tpu.memory_space<vmem>>, %arg7: memref<16x96xf32, #tpu.memory_space<vmem>>) attributes {dimension_semantics = [#tpu.dimension_semantics<parallel>, #tpu.dimension_semantics<parallel>, #tpu.dimension_semantics<arbitrary>], iteration_bounds = array<i64: 1, 1, 1>, scalar_prefetch = 0 : i64, scratch_operands = 1 : i64, tpu.core_type = #tpu.core_type<tc>, window_params = [{transform_indices = @transform_0, window_bounds = array<i64: 16, 16>}, {transform_indices = @transform_1, window_bounds = array<i64: 16, 96>}, {transform_indices = @transform_2, window_bounds = array<i64: 1, 96>}, {transform_indices = @transform_3, window_bounds = array<i64: 16, 96>}]} {
    %c0_i32 = arith.constant 0 : i32
    %0 = arith.cmpi eq, %arg2, %c0_i32 : i32
    %1 = arith.extui %0 : i1 to i32
    %c0_i32_0 = arith.constant 0 : i32
    %2 = arith.cmpi ne, %1, %c0_i32_0 : i32
    scf.if %2 {
      %c0_10 = arith.constant 0 : index
      %c0_11 = arith.constant 0 : index
      %12 = vector.load %arg5[%c0_10, %c0_11] : memref<1x96xf32, #tpu.memory_space<vmem>>, vector<1x96xf32>
      %13 = vector.shape_cast %12 : vector<1x96xf32> to vector<1x96xf32>
      %14 = vector.broadcast %13 : vector<1x96xf32> to vector<16x96xf32>
      %c0_12 = arith.constant 0 : index
      %c0_13 = arith.constant 0 : index
      %15 = vector.load %arg7[%c0_12, %c0_13] : memref<16x96xf32, #tpu.memory_space<vmem>>, vector<16x96xf32>
      tpu.vector_store %arg7[%c0_12, %c0_13], %14 {strides = array<i32>} : memref<16x96xf32, #tpu.memory_space<vmem>>, vector<16x96xf32>,
    } else {
    }
    %c0 = arith.constant 0 : index
    %c0_1 = arith.constant 0 : index
    %3 = vector.load %arg7[%c0, %c0_1] : memref<16x96xf32, #tpu.memory_space<vmem>>, vector<16x96xf32>
    %c0_2 = arith.constant 0 : index
    %c0_3 = arith.constant 0 : index
    %4 = vector.load %arg3[%c0_2, %c0_3] : memref<16x16xbf16, #tpu.memory_space<vmem>>, vector<16x16xbf16>
    %c0_4 = arith.constant 0 : index
    %c0_5 = arith.constant 0 : index
    %5 = vector.load %arg4[%c0_4, %c0_5] : memref<16x96xbf16, #tpu.memory_space<vmem>>, vector<16x96xbf16>
    %cst = arith.constant dense<0.000000e+00> : vector<16x96xf32>
    %6 = tpu.matmul %4, %5, %cst {dimension_numbers = #tpu.dot_dimension_numbers<[1], [0], [0], [1], [0, 0, 1, 1], [], []>} : vector<16x16xbf16>, vector<16x96xbf16>, vector<16x96xf32> -> vector<16x96xf32>
    %7 = arith.addf %3, %6 : vector<16x96xf32>
    %c0_6 = arith.constant 0 : index
    %c0_7 = arith.constant 0 : index
    %8 = vector.load %arg7[%c0_6, %c0_7] : memref<16x96xf32, #tpu.memory_space<vmem>>, vector<16x96xf32>
    tpu.vector_store %arg7[%c0_6, %c0_7], %7 {strides = array<i32>} : memref<16x96xf32, #tpu.memory_space<vmem>>, vector<16x96xf32>,
    %c0_i32_8 = arith.constant 0 : i32
    %9 = arith.cmpi eq, %arg2, %c0_i32_8 : i32
    %10 = arith.extui %9 : i1 to i32
    %c0_i32_9 = arith.constant 0 : i32
    %11 = arith.cmpi ne, %10, %c0_i32_9 : i32
    scf.if %11 {
      %c0_10 = arith.constant 0 : index
      %c0_11 = arith.constant 0 : index
      %12 = vector.load %arg7[%c0_10, %c0_11] : memref<16x96xf32, #tpu.memory_space<vmem>>, vector<16x96xf32>
      %13 = arith.truncf %12 : vector<16x96xf32> to vector<16x96xbf16>
      %c0_12 = arith.constant 0 : index
      %c0_13 = arith.constant 0 : index
      %14 = vector.load %arg6[%c0_12, %c0_13] : memref<16x96xbf16, #tpu.memory_space<vmem>>, vector<16x96xbf16>
      tpu.vector_store %arg6[%c0_12, %c0_13], %13 {strides = array<i32>} : memref<16x96xbf16, #tpu.memory_space<vmem>>, vector<16x96xbf16>,
    } else {
    }
    return
  }
  func.func @transform_0(%arg0: i32, %arg1: i32, %arg2: i32) -> (i32, i32) {
    %c0_i32 = arith.constant 0 : i32
    return %arg0, %arg2 : i32, i32
  }
  func.func @transform_1(%arg0: i32, %arg1: i32, %arg2: i32) -> (i32, i32) {
    %c0_i32 = arith.constant 0 : i32
    return %arg2, %arg1 : i32, i32
  }
  func.func @transform_2(%arg0: i32, %arg1: i32, %arg2: i32) -> (i32, i32) {
    %c0_i32 = arith.constant 0 : i32
    %c0_i32_0 = arith.constant 0 : i32
    return %c0_i32, %arg1 : i32, i32
  }
  func.func @transform_3(%arg0: i32, %arg1: i32, %arg2: i32) -> (i32, i32) {
    %c0_i32 = arith.constant 0 : i32
    return %arg0, %arg1 : i32, i32
  }
}

</mosaic_0001>

<bundles_post_ra>
// kernel: tpu_custom_call.1
= control target key start
LH: loop header
LB: loop body
LE: loop exit
PB: predicated region body
PF: predicated region fallthrough
CT: control target
= control target key end

     0   :  { %8 = vsyncpa [#allocation4], 0  ;;  %s274_s0 = inlined_call_operand.hbm [shape: bf16[16,16], index: 0, kind: input, shape index: {}]   ;;  %s275_s1 = inlined_call_operand.hbm [shape: bf16[16,96], index: 1, kind: input, shape index: {}]   ;;  %s276_s2 = inlined_call_operand.vmem [shape: f32[1,96], index: 2, kind: input, shape index: {}]   ;;  %s277_s3 = inlined_call_operand.hbm [shape: bf16[16,96], index: 3, kind: output, shape index: {}]  }
   0x1   :  { %9 = vsyncpa [#allocation7], 0 }
   0x2   :  { %10 = vsyncpa [#allocation5], 0  ;;  %s15_s14 = sshll.u32 %s274_s0, 4  ;;  %s224_s15 = smov [#allocation3]   ;;  %s16_s14 = int_to_ptr.hbm [resolvable:$true] %s15_s14 }
   0x3   :  { %s17_s16 = sshll.u32 %s224_s15, 4  ;;  %s28_s19 = sshll.u32 %s275_s1, 4  ;;  %s18_s16 = int_to_ptr.vmem [resolvable:$true] %s17_s16  ;;  %s29_s19 = int_to_ptr.hbm [resolvable:$true] %s28_s19 }
   0x4   :  { %s225_s20 = smov 64   ;;  %s226_s21 = smov 4  }
   0x5   :  { %23 = dma.hbm_to_vmem [thread:$0]  %s16_s14, 128, %s18_s16, [#allocation4], %s225_s20, %s225_s20, %s226_s21  }
   0x6   :  { %s227_s22 = smov [#allocation6]  }
   0x7   :  { %s30_s23 = sshll.u32 %s227_s22, 4  ;;  %s31_s23 = int_to_ptr.vmem [resolvable:$true] %s30_s23 }
   0x8   :  { %36 = dma.hbm_to_vmem [thread:$0]  %s29_s19, 128, %s31_s23, [#allocation7], %s225_s20, %s225_s20, %s226_s21  }
   0x9   :  { %218 = dma.done.wait [#allocation4], 128  }
   0xa   :  { %219 = vsyncadd [#allocation4], 4294967168 }
   0xb   :  { %220 = dma.done.wait [#allocation7], 128  }
   0xc   :  { %221 = vsyncadd [#allocation7], 4294967168  ;;  %v139_v0 = vld [vmem:[#allocation6] sm:$0xff]  ;;  %vm56_vm0 = vcmask 785408   ;;  %v138_v1 = vld [vmem:[#allocation3] sm:$0xff]  ;;  %vm76_vm1 = vcmask 130048  }
   0xd   :  { %v145_v2 = vld [vmem:[%s276_s2] ss:$0 sm:$0xff]  ;;  %87 = vmatpush.bf16.msra.mxu0 %v139_v0  ;;  %vm106_vm2 = vcmask 781312   ;;  %s228_s2 = smov [#allocation8]   ;;  %s115_s27 = sshll.u32 %s277_s3, 4  ;;  %s116_s27 = int_to_ptr.hbm [resolvable:$true] %s115_s27 }
   0xe   :  { %57 = vst.msk [vmem:[#allocation2] sm:$0xff] %vm56_vm0, %v145_v2  ;;  %s113_s24 = sshll.u32 %s228_s2, 4  ;;  %s114_s24 = int_to_ptr.vmem [resolvable:$true] %s113_s24 }
   0xf   :  { %58 = vst.msk [vmem:[#allocation2 + $0x8] sm:$0xff] %vm56_vm0, %v145_v2 }
  0x10   :  { %137 = vmatmul.msk.bf16.vlgmr.msra.gmra.mxu0 %vm76_vm1, %v138_v1 }
  0x15   :  { %v59_v3 = vld [vmem:[#allocation2] sm:$0xff] }
  0x16   :  { %v60_v6 = vld [vmem:[#allocation2 + $0x8] sm:$0xff] }
  0x8d   :  { %v89_v4 = vpop.f32.mrf.mxu0 }
  0x8e   :  { %v94_v5 = vadd.f32 %v89_v4, %v59_v3 }
  0x90   :  { %97 = vst.msk [vmem:[#allocation2] sm:$0xff] %vm56_vm0, %v94_v5 }
  0x95   :  { %v91_v7 = vpop.f32.mrf.mxu0 }
  0x96   :  { %v95_v8 = vadd.f32 %v91_v7, %v60_v6 }
  0x97   :  { %v102_v9 = vld [vmem:[#allocation2] sm:$0xff] }
  0x98   :  { %98 = vst.msk [vmem:[#allocation2 + $0x8] sm:$0xff] %vm56_vm0, %v95_v8  ;;  %v104_v10 = vpack.c.bf16 %v102_v9, %v102_v9 }
  0x9a   :  { %107 = vst.msk [vmem:[#allocation8] sm:$0xf] %vm106_vm2, %v104_v10 }
  0x9f   :  { %v103_v11 = vld [vmem:[#allocation2 + $0x8] sm:$0xff] }
  0xa0   :  { %v105_v12 = vpack.c.bf16 %v103_v11, %v103_v11 }
  0xa2   :  { %108 = vst.msk [vmem:[#allocation8 + $0x4] sm:$0xf] %vm106_vm2, %v105_v12 }
  0xa3   :  { %121 = dma.vmem_to_hbm [thread:$0]  %s114_s24, 128, %s116_s27, [#allocation5], %s225_s20, %s225_s20, %s226_s21  }
  0xa4   :  { %222 = dma.done.wait [#allocation5], 128  }
  0xa5   :  { %223 = vsyncadd [#allocation5], 4294967168 }
  0xa6   :  { %126 = vsyncpa [#allocation4], 1 }
  0xa7   :  { %127 = vsyncpa [#allocation7], 1 }
  0xa8   :  { %128 = vsyncpa [#allocation5], 1 }

</bundles_post_ra>
